<compile_context>
chip_gen: v5e
topology: v5e:2x2
jax: 0.10.0
libtpu: 0.0.40
codegen_flags: <defaults>
</compile_context>

<pallas_src>
import jax
import jax.numpy as jnp
from jax import lax
from jax.experimental import pallas as pl
from jax.experimental.pallas import tpu as pltpu


# Contract the attention dim of `energy` [TS, A] against w_out [1, A]:
# rhs-transposed dimension numbers (same TRANS_B pattern as the TPU flash-attention kernel).
_TRANS_B_DIMS = (((1,), (1,)), ((), ()))


def bahdanau_kernel(enc_ref, dec_ref,
                    w_enc_ref, b_enc_ref,
                    w_dec_ref, b_dec_ref,
                    w_out_ref, b_out_ref,
                    ctx_ref, attn_ref,
                    m_ref, l_ref, acc_ref):
    s = pl.program_id(1)
    n_s = pl.num_programs(1)

    @pl.when(s == 0)
    def _init():
        m_ref[...] = jnp.full_like(m_ref, -jnp.inf)
        l_ref[...] = jnp.zeros_like(l_ref)
        acc_ref[...] = jnp.zeros_like(acc_ref)

    enc_tile = enc_ref[0]                                   # [TS, E], input dtype (no upcast)
    dec_row = dec_ref[0]                                    # [1, D]

    # encoder_features = enc @ W_enc + b_enc                -> [TS, A] (f32 accumulation)
    enc_feat = jnp.dot(enc_tile, w_enc_ref[...],
                       preferred_element_type=jnp.float32) + b_enc_ref[...]
    # decoder_features = dec @ W_dec + b_dec                -> [1, A] (broadcast over seq)
    dec_feat = jnp.dot(dec_row, w_dec_ref[...],
                       preferred_element_type=jnp.float32) + b_dec_ref[...]
    energy = jnp.tanh(enc_feat + dec_feat)                  # [TS, A]

    # alignment scores as a lane-dense row: w_out [1,A] . energy^T -> [1, TS]
    scores = lax.dot_general(w_out_ref[...].astype(jnp.float32), energy,
                             dimension_numbers=_TRANS_B_DIMS,
                             preferred_element_type=jnp.float32)
    scores = scores + b_out_ref[0]                          # scalar bias from SMEM

    # Stash raw scores for this tile in the (VMEM-resident) attn output block.
    attn_ref[:, pl.ds(s, 1), :] = scores.reshape(1, 1, scores.shape[-1])

    # ---- online softmax update ----
    tile_max = jnp.max(scores, axis=-1, keepdims=True)      # [1, 1]
    m_prev = m_ref[...]
    m_new = jnp.maximum(m_prev, tile_max)
    alpha = jnp.exp(m_prev - m_new)                         # == 0 on the first tile
    p = jnp.exp(scores - m_new)                             # [1, TS]

    l_new = alpha * l_ref[...] + jnp.sum(p, axis=-1, keepdims=True)
    acc_new = alpha * acc_ref[...] + jnp.dot(
        p.astype(enc_tile.dtype), enc_tile, preferred_element_type=jnp.float32)

    m_ref[...] = m_new
    l_ref[...] = l_new
    acc_ref[...] = acc_new

    @pl.when(s == n_s - 1)
    def _finalize():
        inv_l = 1.0 / l_new                                 # [1, 1]
        # normalized attention weights from the stashed raw scores (m_new == global max)
        attn_ref[...] = (jnp.exp(attn_ref[...] - m_new) * inv_l).astype(attn_ref.dtype)
        ctx_ref[...] = (acc_new * inv_l).reshape(ctx_ref.shape).astype(ctx_ref.dtype)


def bahdanau_attention(encoder_outputs, decoder_hidden, params, *, seq_tile=128):
    B, S, E = encoder_outputs.shape
    D = decoder_hidden.shape[-1]
    A = params["w_enc"].shape[-1]

    # Sequence tile: 128 keeps enc tiles (8,128)-aligned; fall back to full S otherwise.
    ts = seq_tile if S % seq_tile == 0 else S
    n_s = S // ts
    assert n_s * ts == S

    dec3 = decoder_hidden.reshape(B, 1, D)

    ctx3, attn3 = pl.pallas_call(
        bahdanau_kernel,
        out_shape=(
            jax.ShapeDtypeStruct((B, 1, E), jnp.float32),      # context vector
            jax.ShapeDtypeStruct((B, n_s, ts), jnp.float32),   # attention weights (tiled)
        ),
        grid_spec=pltpu.PrefetchScalarGridSpec(
            num_scalar_prefetch=0,
            grid=(B, n_s),                                     # batch outer, seq-tiles inner
            in_specs=[
                pl.BlockSpec((1, ts, E), lambda b, s: (b, s, 0)),   # enc tile (pipelined)
                pl.BlockSpec((1, 1, D), lambda b, s: (b, 0, 0)),    # decoder hidden
                pl.BlockSpec((E, A), lambda b, s: (0, 0)),          # w_enc
                pl.BlockSpec((1, A), lambda b, s: (0, 0)),          # b_enc
                pl.BlockSpec((D, A), lambda b, s: (0, 0)),          # w_dec
                pl.BlockSpec((1, A), lambda b, s: (0, 0)),          # b_dec
                pl.BlockSpec((1, A), lambda b, s: (0, 0)),          # w_out (row, torch layout)
                pl.BlockSpec(memory_space=pltpu.MemorySpace.SMEM),  # b_out scalar
            ],
            out_specs=(
                pl.BlockSpec((1, 1, E), lambda b, s: (b, 0, 0)),     # resident across seq axis
                pl.BlockSpec((1, n_s, ts), lambda b, s: (b, 0, 0)),  # resident across seq axis
            ),
            scratch_shapes=[
                pltpu.VMEM((1, 1), jnp.float32),   # running max
                pltpu.VMEM((1, 1), jnp.float32),   # running denom
                pltpu.VMEM((1, E), jnp.float32),   # context accumulator (f32)
            ],
        ),
        compiler_params=pltpu.CompilerParams(
            dimension_semantics=("parallel", "arbitrary"),
        ),
    )(encoder_outputs, dec3,
      params["w_enc"], params["b_enc"],
      params["w_dec"], params["b_dec"],
      params["w_out"], params["b_out"])

    return ctx3.reshape(B, E), attn3.reshape(B, S)


def reference(encoder_outputs, decoder_hidden, params):
    hp = lax.Precision.HIGHEST
    enc_feat = jnp.einsum("bse,ea->bsa", encoder_outputs, params["w_enc"],
                          precision=hp) + params["b_enc"]
    dec_feat = jnp.einsum("bd,da->ba", decoder_hidden, params["w_dec"],
                          precision=hp) + params["b_dec"]
    energy = jnp.tanh(enc_feat + dec_feat[:, None, :])
    scores = jnp.einsum("bsa,a->bs", energy, params["w_out"][0],
                        precision=hp) + params["b_out"][0]
    attn = jax.nn.softmax(scores, axis=-1)
    ctx = jnp.einsum("bs,bse->be", attn, encoder_outputs, precision=hp)
    return ctx, attn


if __name__ == "__main__":
    # Small but lane-aligned shapes: 2 seq tiles of 128 exercise the online softmax.
    B, S = 2, 256
    ENC_H = DEC_H = ATTN = 128

    key = jax.random.PRNGKey(0)
    ks = jax.random.split(key, 8)

    encoder_outputs = jax.random.normal(ks[0], (B, S, ENC_H), jnp.float32)
    decoder_hidden = jax.random.normal(ks[1], (B, DEC_H), jnp.float32)

    params = {
        # weights as [in, out]; biases as [1, out]; energy layer weight is [1, A], bias (1,)
        "w_enc": jax.random.normal(ks[2], (ENC_H, ATTN), jnp.float32) * 0.1,
        "b_enc": jax.random.normal(ks[3], (1, ATTN), jnp.float32) * 0.1,
        "w_dec": jax.random.normal(ks[4], (DEC_H, ATTN), jnp.float32) * 0.1,
        "b_dec": jax.random.normal(ks[5], (1, ATTN), jnp.float32) * 0.1,
        "w_out": jax.random.normal(ks[6], (1, ATTN), jnp.float32) * 0.1,
        "b_out": jax.random.normal(ks[7], (1,), jnp.float32) * 0.1,
    }

    ctx, attn = bahdanau_attention(encoder_outputs, decoder_hidden, params)
    jax.block_until_ready((ctx, attn))

    ctx_ref, attn_ref = reference(encoder_outputs, decoder_hidden, params)
    assert ctx.shape == (B, ENC_H) and attn.shape == (B, S)
    assert bool(jnp.all(jnp.isfinite(ctx))) and bool(jnp.all(jnp.isfinite(attn)))
    assert jnp.allclose(attn, attn_ref, atol=1e-3, rtol=1e-3), \
        float(jnp.max(jnp.abs(attn - attn_ref)))
    assert jnp.allclose(ctx, ctx_ref, atol=1e-3, rtol=1e-3), \
        float(jnp.max(jnp.abs(ctx - ctx_ref)))

    print("KERNEL_OK")
</pallas_src>

<mosaic_0001>
module attributes {stable_mosaic.version = 11 : i64} {
  func.func @bahdanau_kernel(%arg0: i32, %arg1: i32, %arg2: memref<1x128x128xf32, #tpu.memory_space<vmem>>, %arg3: memref<1x1x128xf32, #tpu.memory_space<vmem>>, %arg4: memref<128x128xf32, #tpu.memory_space<vmem>>, %arg5: memref<1x128xf32, #tpu.memory_space<vmem>>, %arg6: memref<128x128xf32, #tpu.memory_space<vmem>>, %arg7: memref<1x128xf32, #tpu.memory_space<vmem>>, %arg8: memref<1x128xf32, #tpu.memory_space<vmem>>, %arg9: memref<1xf32, #tpu.memory_space<smem>>, %arg10: memref<1x1x128xf32, #tpu.memory_space<vmem>>, %arg11: memref<1x2x128xf32, #tpu.memory_space<vmem>>, %arg12: memref<1x1xf32, #tpu.memory_space<vmem>>, %arg13: memref<1x1xf32, #tpu.memory_space<vmem>>, %arg14: memref<1x128xf32, #tpu.memory_space<vmem>>) attributes {dimension_semantics = [#tpu.dimension_semantics<parallel>, #tpu.dimension_semantics<arbitrary>], iteration_bounds = array<i64: 2, 2>, scalar_prefetch = 0 : i64, scratch_operands = 3 : i64, tpu.core_type = #tpu.core_type<tc>, window_params = [{transform_indices = @transform_0, window_bounds = array<i64: 1, 128, 128>}, {transform_indices = @transform_1, window_bounds = array<i64: 1, 1, 128>}, {pipeline_mode = #tpu.pipeline_mode<synchronous>, transform_indices = @transform_2, window_bounds = array<i64: 128, 128>}, {pipeline_mode = #tpu.pipeline_mode<synchronous>, transform_indices = @transform_3, window_bounds = array<i64: 1, 128>}, {pipeline_mode = #tpu.pipeline_mode<synchronous>, transform_indices = @transform_4, window_bounds = array<i64: 128, 128>}, {pipeline_mode = #tpu.pipeline_mode<synchronous>, transform_indices = @transform_5, window_bounds = array<i64: 1, 128>}, {pipeline_mode = #tpu.pipeline_mode<synchronous>, transform_indices = @transform_6, window_bounds = array<i64: 1, 128>}, {transform_indices = @transform_7, window_bounds = array<i64: 1>}, {transform_indices = @transform_8, window_bounds = array<i64: 1, 1, 128>}, {transform_indices = @transform_9, window_bounds = array<i64: 1, 2, 128>}]} {
    %c0_i32 = arith.constant 0 : i32
    %0 = arith.cmpi eq, %arg1, %c0_i32 : i32
    %1 = arith.extui %0 : i1 to i32
    %c0_i32_0 = arith.constant 0 : i32
    %2 = arith.cmpi ne, %1, %c0_i32_0 : i32
    scf.if %2 {
      %cst_37 = arith.constant 0xFF800000 : f32
      %52 = vector.broadcast %cst_37 : f32 to vector<1x1xf32>
      %c0_38 = arith.constant 0 : index
      %c0_39 = arith.constant 0 : index
      %53 = vector.load %arg12[%c0_38, %c0_39] : memref<1x1xf32, #tpu.memory_space<vmem>>, vector<1x1xf32>
      tpu.vector_store %arg12[%c0_38, %c0_39], %52 {strides = array<i32>} : memref<1x1xf32, #tpu.memory_space<vmem>>, vector<1x1xf32>,
      %cst_40 = arith.constant 0.000000e+00 : f32
      %54 = vector.broadcast %cst_40 : f32 to vector<1x1xf32>
      %c0_41 = arith.constant 0 : index
      %c0_42 = arith.constant 0 : index
      %55 = vector.load %arg13[%c0_41, %c0_42] : memref<1x1xf32, #tpu.memory_space<vmem>>, vector<1x1xf32>
      tpu.vector_store %arg13[%c0_41, %c0_42], %54 {strides = array<i32>} : memref<1x1xf32, #tpu.memory_space<vmem>>, vector<1x1xf32>,
      %cst_43 = arith.constant 0.000000e+00 : f32
      %56 = vector.broadcast %cst_43 : f32 to vector<1x128xf32>
      %c0_44 = arith.constant 0 : index
      %c0_45 = arith.constant 0 : index
      %57 = vector.load %arg14[%c0_44, %c0_45] : memref<1x128xf32, #tpu.memory_space<vmem>>, vector<1x128xf32>
      tpu.vector_store %arg14[%c0_44, %c0_45], %56 {strides = array<i32>} : memref<1x128xf32, #tpu.memory_space<vmem>>, vector<1x128xf32>,
    } else {
    }
    %c0 = arith.constant 0 : index
    %c0_1 = arith.constant 0 : index
    %c0_2 = arith.constant 0 : index
    %3 = vector.load %arg2[%c0, %c0_1, %c0_2] : memref<1x128x128xf32, #tpu.memory_space<vmem>>, vector<1x128x128xf32>
    %4 = vector.shape_cast %3 : vector<1x128x128xf32> to vector<128x128xf32>
    %c0_3 = arith.constant 0 : index
    %c0_4 = arith.constant 0 : index
    %c0_5 = arith.constant 0 : index
    %5 = vector.load %arg3[%c0_3, %c0_4, %c0_5] : memref<1x1x128xf32, #tpu.memory_space<vmem>>, vector<1x1x128xf32>
    %6 = vector.shape_cast %5 : vector<1x1x128xf32> to vector<1x128xf32>
    %c0_6 = arith.constant 0 : index
    %c0_7 = arith.constant 0 : index
    %7 = vector.load %arg4[%c0_6, %c0_7] : memref<128x128xf32, #tpu.memory_space<vmem>>, vector<128x128xf32>
    %cst = arith.constant dense<0.000000e+00> : vector<128x128xf32>
    %8 = tpu.matmul %4, %7, %cst {dimension_numbers = #tpu.dot_dimension_numbers<[1], [0], [0], [1], [0, 0, 1, 1], [], []>} : vector<128x128xf32>, vector<128x128xf32>, vector<128x128xf32> -> vector<128x128xf32>
    %c0_8 = arith.constant 0 : index
    %c0_9 = arith.constant 0 : index
    %9 = vector.load %arg5[%c0_8, %c0_9] : memref<1x128xf32, #tpu.memory_space<vmem>>, vector<1x128xf32>
    %10 = vector.broadcast %9 : vector<1x128xf32> to vector<128x128xf32>
    %11 = arith.addf %8, %10 : vector<128x128xf32>
    %c0_10 = arith.constant 0 : index
    %c0_11 = arith.constant 0 : index
    %12 = vector.load %arg6[%c0_10, %c0_11] : memref<128x128xf32, #tpu.memory_space<vmem>>, vector<128x128xf32>
    %cst_12 = arith.constant dense<0.000000e+00> : vector<1x128xf32>
    %13 = tpu.matmul %6, %12, %cst_12 {dimension_numbers = #tpu.dot_dimension_numbers<[1], [0], [0], [1], [0, 0, 1, 1], [], []>} : vector<1x128xf32>, vector<128x128xf32>, vector<1x128xf32> -> vector<1x128xf32>
    %c0_13 = arith.constant 0 : index
    %c0_14 = arith.constant 0 : index
    %14 = vector.load %arg7[%c0_13, %c0_14] : memref<1x128xf32, #tpu.memory_space<vmem>>, vector<1x128xf32>
    %15 = arith.addf %13, %14 : vector<1x128xf32>
    %16 = vector.broadcast %15 : vector<1x128xf32> to vector<128x128xf32>
    %17 = arith.addf %11, %16 : vector<128x128xf32>
    %18 = math.tanh %17 : vector<128x128xf32>
    %c0_15 = arith.constant 0 : index
    %c0_16 = arith.constant 0 : index
    %19 = vector.load %arg8[%c0_15, %c0_16] : memref<1x128xf32, #tpu.memory_space<vmem>>, vector<1x128xf32>
    %cst_17 = arith.constant dense<0.000000e+00> : vector<1x128xf32>
    %20 = tpu.matmul %19, %18, %cst_17 {dimension_numbers = #tpu.dot_dimension_numbers<[1], [1], [0], [0], [0, 0, 1, 0], [], []>} : vector<1x128xf32>, vector<128x128xf32>, vector<1x128xf32> -> vector<1x128xf32>
    %c0_18 = arith.constant 0 : index
    %21 = memref.load %arg9[%c0_18] : memref<1xf32, #tpu.memory_space<smem>>
    %22 = vector.broadcast %21 : f32 to vector<1x128xf32>
    %23 = arith.addf %20, %22 : vector<1x128xf32>
    %24 = vector.shape_cast %23 : vector<1x128xf32> to vector<1x1x128xf32>
    %c0_19 = arith.constant 0 : index
    %25 = arith.index_cast %arg1 : i32 to index
    %c0_20 = arith.constant 0 : index
    %26 = vector.load %arg11[%c0_19, %25, %c0_20] : memref<1x2x128xf32, #tpu.memory_space<vmem>>, vector<1x1x128xf32>
    tpu.vector_store %arg11[%c0_19, %25, %c0_20], %24 {strides = array<i32>} : memref<1x2x128xf32, #tpu.memory_space<vmem>>, vector<1x1x128xf32>,
    %cst_21 = arith.constant dense<0xFF800000> : vector<1xf32>
    %27 = vector.multi_reduction <maximumf>, %23, %cst_21 [1] : vector<1x128xf32> to vector<1xf32>
    %28 = vector.shape_cast %27 : vector<1xf32> to vector<1x1xf32>
    %c0_22 = arith.constant 0 : index
    %c0_23 = arith.constant 0 : index
    %29 = vector.load %arg12[%c0_22, %c0_23] : memref<1x1xf32, #tpu.memory_space<vmem>>, vector<1x1xf32>
    %30 = arith.maximumf %29, %28 : vector<1x1xf32>
    %31 = arith.subf %29, %30 : vector<1x1xf32>
    %32 = math.exp %31 : vector<1x1xf32>
    %33 = vector.broadcast %30 : vector<1x1xf32> to vector<1x128xf32>
    %34 = arith.subf %23, %33 : vector<1x128xf32>
    %35 = math.exp %34 : vector<1x128xf32>
    %c0_24 = arith.constant 0 : index
    %c0_25 = arith.constant 0 : index
    %36 = vector.load %arg13[%c0_24, %c0_25] : memref<1x1xf32, #tpu.memory_space<vmem>>, vector<1x1xf32>
    %37 = arith.mulf %32, %36 : vector<1x1xf32>
    %cst_26 = arith.constant dense<0.000000e+00> : vector<1xf32>
    %38 = vector.multi_reduction <add>, %35, %cst_26 [1] : vector<1x128xf32> to vector<1xf32>
    %39 = vector.shape_cast %38 : vector<1xf32> to vector<1x1xf32>
    %40 = arith.addf %37, %39 : vector<1x1xf32>
    %c0_27 = arith.constant 0 : index
    %c0_28 = arith.constant 0 : index
    %41 = vector.load %arg14[%c0_27, %c0_28] : memref<1x128xf32, #tpu.memory_space<vmem>>, vector<1x128xf32>
    %42 = vector.broadcast %32 : vector<1x1xf32> to vector<1x128xf32>
    %43 = arith.mulf %42, %41 : vector<1x128xf32>
    %cst_29 = arith.constant dense<0.000000e+00> : vector<1x128xf32>
    %44 = tpu.matmul %35, %4, %cst_29 {dimension_numbers = #tpu.dot_dimension_numbers<[1], [0], [0], [1], [0, 0, 1, 1], [], []>} : vector<1x128xf32>, vector<128x128xf32>, vector<1x128xf32> -> vector<1x128xf32>
    %45 = arith.addf %43, %44 : vector<1x128xf32>
    %c0_30 = arith.constant 0 : index
    %c0_31 = arith.constant 0 : index
    %46 = vector.load %arg12[%c0_30, %c0_31] : memref<1x1xf32, #tpu.memory_space<vmem>>, vector<1x1xf32>
    tpu.vector_store %arg12[%c0_30, %c0_31], %30 {strides = array<i32>} : memref<1x1xf32, #tpu.memory_space<vmem>>, vector<1x1xf32>,
    %c0_32 = arith.constant 0 : index
    %c0_33 = arith.constant 0 : index
    %47 = vector.load %arg13[%c0_32, %c0_33] : memref<1x1xf32, #tpu.memory_space<vmem>>, vector<1x1xf32>
    tpu.vector_store %arg13[%c0_32, %c0_33], %40 {strides = array<i32>} : memref<1x1xf32, #tpu.memory_space<vmem>>, vector<1x1xf32>,
    %c0_34 = arith.constant 0 : index
    %c0_35 = arith.constant 0 : index
    %48 = vector.load %arg14[%c0_34, %c0_35] : memref<1x128xf32, #tpu.memory_space<vmem>>, vector<1x128xf32>
    tpu.vector_store %arg14[%c0_34, %c0_35], %45 {strides = array<i32>} : memref<1x128xf32, #tpu.memory_space<vmem>>, vector<1x128xf32>,
    %c1_i32 = arith.constant 1 : i32
    %49 = arith.cmpi eq, %arg1, %c1_i32 : i32
    %50 = arith.extui %49 : i1 to i32
    %c0_i32_36 = arith.constant 0 : i32
    %51 = arith.cmpi ne, %50, %c0_i32_36 : i32
    scf.if %51 {
      %cst_37 = arith.constant 1.000000e+00 : f32
      %52 = vector.broadcast %cst_37 : f32 to vector<1x1xf32>
      %53 = arith.divf %52, %40 : vector<1x1xf32>
      %c0_38 = arith.constant 0 : index
      %c0_39 = arith.constant 0 : index
      %c0_40 = arith.constant 0 : index
      %54 = vector.load %arg11[%c0_38, %c0_39, %c0_40] : memref<1x2x128xf32, #tpu.memory_space<vmem>>, vector<1x2x128xf32>
      %55 = vector.shape_cast %30 : vector<1x1xf32> to vector<1x1x1xf32>
      %56 = vector.broadcast %55 : vector<1x1x1xf32> to vector<1x2x128xf32>
      %57 = arith.subf %54, %56 : vector<1x2x128xf32>
      %58 = math.exp %57 : vector<1x2x128xf32>
      %59 = vector.shape_cast %53 : vector<1x1xf32> to vector<1x1x1xf32>
      %60 = vector.broadcast %59 : vector<1x1x1xf32> to vector<1x2x128xf32>
      %61 = arith.mulf %58, %60 : vector<1x2x128xf32>
      %c0_41 = arith.constant 0 : index
      %c0_42 = arith.constant 0 : index
      %c0_43 = arith.constant 0 : index
      %62 = vector.load %arg11[%c0_41, %c0_42, %c0_43] : memref<1x2x128xf32, #tpu.memory_space<vmem>>, vector<1x2x128xf32>
      tpu.vector_store %arg11[%c0_41, %c0_42, %c0_43], %61 {strides = array<i32>} : memref<1x2x128xf32, #tpu.memory_space<vmem>>, vector<1x2x128xf32>,
      %63 = vector.broadcast %53 : vector<1x1xf32> to vector<1x128xf32>
      %64 = arith.mulf %45, %63 : vector<1x128xf32>
      %65 = vector.shape_cast %64 : vector<1x128xf32> to vector<1x1x128xf32>
      %c0_44 = arith.constant 0 : index
      %c0_45 = arith.constant 0 : index
      %c0_46 = arith.constant 0 : index
      %66 = vector.load %arg10[%c0_44, %c0_45, %c0_46] : memref<1x1x128xf32, #tpu.memory_space<vmem>>, vector<1x1x128xf32>
      tpu.vector_store %arg10[%c0_44, %c0_45, %c0_46], %65 {strides = array<i32>} : memref<1x1x128xf32, #tpu.memory_space<vmem>>, vector<1x1x128xf32>,
    } else {
    }
    return
  }
  func.func @transform_0(%arg0: i32, %arg1: i32) -> (i32, i32, i32) {
    %c0_i32 = arith.constant 0 : i32
    %c0_i32_0 = arith.constant 0 : i32
    return %arg0, %arg1, %c0_i32 : i32, i32, i32
  }
  func.func @transform_1(%arg0: i32, %arg1: i32) -> (i32, i32, i32) {
    %c0_i32 = arith.constant 0 : i32
    %c0_i32_0 = arith.constant 0 : i32
    %c0_i32_1 = arith.constant 0 : i32
    return %arg0, %c0_i32, %c0_i32_0 : i32, i32, i32
  }
  func.func @transform_2(%arg0: i32, %arg1: i32) -> (i32, i32) {
    %c0_i32 = arith.constant 0 : i32
    %c0_i32_0 = arith.constant 0 : i32
    %c0_i32_1 = arith.constant 0 : i32
    return %c0_i32, %c0_i32_0 : i32, i32
  }
  func.func @transform_3(%arg0: i32, %arg1: i32) -> (i32, i32) {
    %c0_i32 = arith.constant 0 : i32
    %c0_i32_0 = arith.constant 0 : i32
    %c0_i32_1 = arith.constant 0 : i32
    return %c0_i32, %c0_i32_0 : i32, i32
  }
  func.func @transform_4(%arg0: i32, %arg1: i32) -> (i32, i32) {
    %c0_i32 = arith.constant 0 : i32
    %c0_i32_0 = arith.constant 0 : i32
    %c0_i32_1 = arith.constant 0 : i32
    return %c0_i32, %c0_i32_0 : i32, i32
  }
  func.func @transform_5(%arg0: i32, %arg1: i32) -> (i32, i32) {
    %c0_i32 = arith.constant 0 : i32
    %c0_i32_0 = arith.constant 0 : i32
    %c0_i32_1 = arith.constant 0 : i32
    return %c0_i32, %c0_i32_0 : i32, i32
  }
  func.func @transform_6(%arg0: i32, %arg1: i32) -> (i32, i32) {
    %c0_i32 = arith.constant 0 : i32
    %c0_i32_0 = arith.constant 0 : i32
    %c0_i32_1 = arith.constant 0 : i32
    return %c0_i32, %c0_i32_0 : i32, i32
  }
  func.func @transform_7(%arg0: i32, %arg1: i32) -> i32 {
    %c0_i32 = arith.constant 0 : i32
    %c0_i32_0 = arith.constant 0 : i32
    return %c0_i32 : i32
  }
  func.func @transform_8(%arg0: i32, %arg1: i32) -> (i32, i32, i32) {
    %c0_i32 = arith.constant 0 : i32
    %c0_i32_0 = arith.constant 0 : i32
    %c0_i32_1 = arith.constant 0 : i32
    return %arg0, %c0_i32, %c0_i32_0 : i32, i32, i32
  }
  func.func @transform_9(%arg0: i32, %arg1: i32) -> (i32, i32, i32) {
    %c0_i32 = arith.constant 0 : i32
    %c0_i32_0 = arith.constant 0 : i32
    %c0_i32_1 = arith.constant 0 : i32
    return %arg0, %c0_i32, %c0_i32_0 : i32, i32, i32
  }
}

</mosaic_0001>

<bundles_post_ra>
// kernel: tpu_custom_call.1
= control target key start
LH: loop header
LB: loop body
LE: loop exit
PB: predicated region body
PF: predicated region fallthrough
CT: control target
= control target key end

     0   :  { %s1780_s0 = inlined_call_operand.hbm [shape: f32[2,256,128], index: 0, kind: input, shape index: {}]   ;;  %s1781_s1 = inlined_call_operand.vmem [shape: f32[2,1,128], index: 1, kind: input, shape index: {}]   ;;  %s1782_s2 = inlined_call_operand.hbm [shape: f32[128,128], index: 2, kind: input, shape index: {}]   ;;  %s1783_s3 = inlined_call_operand.vmem [shape: f32[1,128], index: 3, kind: input, shape index: {}]   ;;  %s1784_s4 = inlined_call_operand.hbm [shape: f32[128,128], index: 4, kind: input, shape index: {}]   ;;  %s1785_s5 = inlined_call_operand.vmem [shape: f32[1,128], index: 5, kind: input, shape index: {}]   ;;  %s1786_s6 = inlined_call_operand.vmem [shape: f32[1,128], index: 6, kind: input, shape index: {}]   ;;  %s1787_s7 = inlined_call_operand.<no memory space> [shape: f32[1], index: 7, kind: input, shape index: {}]   ;;  %s1788_s8 = inlined_call_operand.hbm [shape: f32[2,1,128], index: 8, kind: output, shape index: {0}]   ;;  %s1789_s9 = inlined_call_operand.hbm [shape: f32[2,2,128], index: 9, kind: output, shape index: {1}]  }
   0x1   :  { %1802 = sst [smem:[#allocation25_spill]] %s1781_s1 }
   0x2   :  { %1803 = sst [smem:[#allocation26_spill]] %s1782_s2 }
   0x3   :  { %1804 = sst [smem:[#allocation27_spill]] %s1783_s3 }
   0x4   :  { %1805 = sst [smem:[#allocation28_spill]] %s1784_s4 }
   0x5   :  { %1806 = sst [smem:[#allocation29_spill]] %s1785_s5 }
   0x6   :  { %1807 = sst [smem:[#allocation30_spill]] %s1786_s6 }
   0x7   :  { %1808 = sst [smem:[#allocation31_spill]] %s1788_s8 }
   0x8   :  { %1809 = sst [smem:[#allocation32_spill]] %s1789_s9 }
   0x9   :  { %15 = sst [smem:[#allocation5]] %s1787_s7 }
   0xa   :  { %16 = vsyncpa [#allocation7], 0 }
   0xb   :  { %18 = vsyncpa [#allocation7 + $0x1], 0 }
   0xc   :  { %19 = vsyncpa [#allocation10], 0 }
   0xd   :  { %20 = vsyncpa [#allocation8], 0 }
   0xe   :  { %22 = vsyncpa [#allocation8 + $0x1], 0 }
   0xf   :  { %23 = vsyncpa [#allocation14], 0 }
  0x10   :  { %25 = vsyncpa [#allocation14 + $0x1], 0  ;;  %s1450_s11 = smov 0   ;;  %s1452_s12 = smov 0  }
  0x11   :  { %s1454_s13 = smov 0   ;;  %s1456_s14 = smov 0  }
  0x12   :  { %s1458_s15 = smov 0   ;;  %s1460_s16 = smov 0  }
  0x13   :  { %s1462_s7 = smov 0   ;;  %s1464_s17 = smov 0  }
  0x14   :  { %s1466_s18 = smov 0   ;;  %s1468_s19 = smov 0  }
  0x15   :  { %s1470_s20 = smov 0  }
  0x16 LB: > { %1810 = sst [smem:[#allocation19_spill]] %s1347_s11  ;;  %s907_s21 = sadd.s32 4294967295, %s1387_s20   ;;  %s1387_s20 = sphi %s1470_s20, %s31_s20   ;;  %s1383_s19 = sphi %s1468_s19, %s1851_s19   ;;  %s1379_s18 = sphi %s1466_s18, %s1850_s18   ;;  %s1375_s17 = sphi %s1464_s17, %s1849_s17   ;;  %s1371_s7 = sphi %s1462_s7, %s1848_s7   ;;  %s1367_s16 = sphi %s1460_s16, %s1847_s16   ;;  %s1363_s15 = sphi %s1458_s15, %s1846_s15   ;;  %s1359_s14 = sphi %s1456_s14, %s1845_s14   ;;  %s1355_s13 = sphi %s1454_s13, %s1844_s13   ;;  %s1351_s12 = sphi %s1452_s12, %s1843_s12   ;;  %s1347_s11 = sphi %s1450_s11, %s1842_s11  }
  0x17   : > { %1811 = sst [smem:[#allocation20_spill]] %s1371_s7  ;;  %s908_s22 = sadd.s32 4294967294, %s1387_s20  }
  0x18   : > { %1812 = sst [smem:[#allocation21_spill]] %s1375_s17  ;;  %p65_p0 = scmp.ne.s32.totalorder %s1363_s15, %s1359_s14 }
  0x19   : > { %p1506_p1 = scmp.eq.s32.totalorder %s907_s21, 0  ;;  %p240_p2 = scmp.ne.s32.totalorder %s1355_s13, %s1351_s12 }
  0x1a   : > { %p241_p3 = scmp.eq.s32.totalorder %s907_s21, 3  ;;  %p246_p5 = scmp.ne.s32.totalorder %s1351_s12, %s1347_s11 }
  0x1b   : > { %p1514_p4 = por %p1506_p1, %p65_p0  ;;  %p247_p7 = scmp.eq.s32.totalorder %s908_s22, 3 }
  0x1c   : > { %p1520_p6 = por %p241_p3, %p240_p2  ;;  %p909_p8 = scmp.ge.s32.totalorder %s1387_s20, 1 }
  0x1d   : > { %p280_p9 = scmp.lt.s32.totalorder %s1387_s20, 5  ;;  %p1526_p10 = por %p247_p7, %p246_p5 }
  0x1e   : > { %s1815_s25 = scalar_select %p1520_p6, 1, 0 }
  0x1f   : > { %s1817_s26 = scalar_select %p1526_p10, 1, 0 }
  0x20   : > { %1816 = sst [smem:[#allocation22_spill]] %s1815_s25  ;;  %p1530_p11 = pnand %p909_p8, %p280_p9 }
  0x21   : > { %1818 = sst [smem:[#allocation23_spill]] %s1817_s26  ;;  %s1389_s10 = smov [#allocation9]  }
  0x22   : > { %s1820_s2 = sld [smem:[#allocation26_spill]]  ;;  %p974_p12 = pneg %p1530_p11 }
  0x23   : > { %s293_s14 = sshll.u32 %s1389_s10, 4  ;;  %s1821_s4 = sld [smem:[#allocation28_spill]]  ;;  %s294_s14 = int_to_ptr.vmem [resolvable:$true] %s293_s14 }
  0x24   : > { %p975_p13 = pnand %p974_p12, %p1506_p1  ;;  %s1791_s29 = smov 128  }
  0x25   : > { %s1392_s10 = smov [#allocation11]   ;;  %s40_s21 = sadd.s32 1, %s1379_s18 }
  0x26   : > { %s310_s26 = sshll.u32 %s1392_s10, 4  ;;  %p41_p0 = scmp.ge.s32.totalorder %s40_s21, 2  ;;  %s311_s26 = int_to_ptr.vmem [resolvable:$true] %s310_s26 }
  0x27   : > { %s43_s22 = sadd.s32 1, %s1383_s19  ;;  %p59_p2 = scmp.ne.s32.totalorder %s1367_s16, %s1363_s15 }
  0x28   : > { %s291_s30 = sshll.u32 %s1820_s2, 4  ;;  %s1792_s2 = smov 8   ;;  %s292_s30 = int_to_ptr.hbm [resolvable:$true] %s291_s30 }
  0x29   : > { %s308_s28 = sshll.u32 %s1821_s4, 4  ;;  %s52_s4 = sadd.s32 1, %s1367_s16  ;;  %s309_s28 = int_to_ptr.hbm [resolvable:$true] %s308_s28 }
  0x2a   : > { %977 = dma.hbm_to_vmem [thread:$0]  (!%p975_p13), %s292_s30, 2048, %s294_s14, [#allocation10], %s1791_s29, %s1791_s29, %s1792_s2  }
  0x2b   : > { %980 = dma.hbm_to_vmem [thread:$0]  (!%p975_p13), %s309_s28, 2048, %s311_s26, [#allocation10], %s1791_s29, %s1791_s29, %s1792_s2  }
  0x2c   : > { %s1853_s21 = smov (%p41_p0, %s40_s21), 0  ;;  %s1855_s22 = smov (!%p41_p0, %s43_s22), %s1383_s19 }
  0x2d   : > { %1822 = sst [smem:[#allocation24_spill]] %s1853_s21  ;;  %s48_s30 = ssub.s32 %s1379_s18, %s1853_s21 }
  0x2e   : > { %p60_p3 = scmp.eq.s32.totalorder %s1387_s20, 0  ;;  %p45_p5 = scmp.ge.s32.totalorder %s1855_s22, 2 }
  0x2f   : > { %s230_s14 = sadd.s32 1, %s1355_s13  ;;  %p994_p8 = scmp.lt.s32.totalorder %s1387_s20, 4 }
  0x30   : > { %p1562_p7 = por %p60_p3, %p59_p2  ;;  %s1857_s22 = smov (%p45_p5, %s1855_s22), 0 }
  0x31   : > { %s333_s28 = sand.u32 1, %s1367_s16   ;;  %s914_s10 = sshll.u32 %s1379_s18, 4 }
  0x32   : > { %s47_s29 = ssub.s32 %s1383_s19, %s1857_s22  ;;  %s913_s21 = sshll.u32 %s333_s28, 7 }
  0x33   : > { %s49_s2 = sor.u32 %s48_s30, %s47_s29  ;;  %p228_p9 = scmp.eq.s32.totalorder %s47_s29, 0 }
  0x34   : > { %p50_p12 = scmp.eq.s32.totalorder %s49_s2, 0  ;;  %s915_s25 = sshll.u32 %s1383_s19, 5 }
  0x35   : > { %s1574_s11 = scalar_select %p228_p9, %s1355_s13, %s230_s14  }
  0x36   : > { %s1577_s9 = scalar_select %p50_p12, %s1367_s16, %s52_s4  }
  0x37   : > { %s342_s8 = sadd.s32 %s915_s25, %s914_s10  ;;  %s337_s6 = scalar_lea.vmem [#allocation6], %s913_s21 }
  0x38   : > { %s347_s3 = sshll.u32 %s337_s6, 4  ;;  %s916_s5 = sshll.u32 %s342_s8, 3  ;;  %s348_s3 = int_to_ptr.vmem [resolvable:$true] %s347_s3 }
  0x39   : > { %s344_s17 = scalar_lea.hbm %s1780_s0, %s916_s5  ;;  %p982_p13 = pnand %p994_p8, %p1562_p7 }
  0x3a   : > { %s345_s29 = sshll.u32 %s344_s17, 4  ;;  %s334_s2 = scalar_lea.sflag [#allocation7], %s333_s28  ;;  %s346_s29 = int_to_ptr.hbm [resolvable:$true] %s345_s29 }
  0x3b   : > { %s1824_s30 = smov 8   ;;  %s1825_s14 = smov 128  }
  0x3c   : > { %984 = dma.hbm_to_vmem [thread:$0]  (!%p982_p13), %s346_s29, 2048, %s348_s3, %s334_s2, %s1825_s14, %s1825_s14, %s1824_s30  }
  0x3d   : > { %365 = sbr.rel (%p1530_p11) target bundleno = 1058 (0x422), region = 52  ;;  %s367_s4 = sand.u32 (!%p1530_p11), 1, %s1363_s15  }
  0x3e   : > { %s918_s6 = sshll.u32 (!%p1530_p11), %s367_s4, 7  ;;  %s368_s8 = scalar_lea.sflag (!%p1530_p11), [#allocation7], %s367_s4 }
  0x3f   : > { %s1593_s1 = scalar_lea.vmem (!%p1530_p11), [#allocation6], %s918_s6 }
  0x42   : > { %1330 = dma.done.wait (%p1514_p4), %s368_s8, 2048  }
  0x43   : > { %1332 = vsyncadd (%p1514_p4), %s368_s8, 4294965248 }
  0x44   : > { %1334 = dma.done.wait (%p1506_p1), [#allocation10], 4096  }
  0x45   : > { %1336 = vsyncadd (%p1506_p1), [#allocation10], 4294963200  ;;  %s1826_s3 = sld [smem:[#allocation21_spill]]  ;;  %s1604_s5 = sand.u32 1, %s1351_s12  }
  0x46   : > { %s921_s7 = sshll.u32 %s1604_s5, 1  ;;  %s1827_s25 = sld [smem:[#allocation25_spill]] }
  0x47   : > { %s416_s21 = scalar_lea.vmem [#allocation12], %s1604_s5  ;;  %s1616_s26 = scalar_lea.vmem [#allocation13], %s921_s7 }
  0x48   : > { %s1828_s23 = sld [smem:[#allocation20_spill]] }
  0x4b   : > { %p425_p11 = scmp.lt.s32.totalorder %s1826_s3, 1 }
  0x4d   : > { %s1859_s3 = smov (!%p425_p11, %s1826_s3), 1 }
  0x4e   : > { %s427_s27 = scalar_lea.vmem %s1827_s25, %s1859_s3  ;;  %p922_p1 = scmp.ne.s32.totalorder %s1828_s23, 0 }
  0x50   : > { %431 = sbr.rel (%p922_p1) target bundleno = 89 (0x59), region = 68 }
  0x55   : > { %vm432_vm0 = vcmask 0   ;;  %v1393_v0 = vmov -inf   ;;  %v1394_v1 = vmov 0.0  }
  0x56   : > { %433 = vst.msk [vmem:[#allocation2] sm:$0x1] %vm432_vm0, %v1393_v0 }
  0x57   : > { %434 = vst.msk [vmem:[#allocation3] sm:$0x1] %vm432_vm0, %v1394_v1 }
  0x58   : > { %435 = vst [vmem:[#allocation4] sm:$0x1] %v1394_v1 }
  0x59 PF: > { %v468_v2 = vld [vmem:[#allocation9 + $0x78] sm:$0xff]  ;;  %v467_v3 = vld [vmem:[#allocation9 + $0x70] sm:$0xff]  ;;  %v466_v4 = vld [vmem:[#allocation9 + $0x68] sm:$0xff]  ;;  %s1830_s14 = sld [smem:[#allocation29_spill]]  ;;  %vm633_vm1 = vcmask 1040384   ;;  %vm686_vm2 = vcmask 0  }
  0x5a   : > { %928 = vmatpush.msra.mxu1 %v468_v2  ;;  %473 = vmatpush.msra.mxu0 %v468_v2  ;;  %v465_v5 = vld [vmem:[#allocation9 + $0x60] sm:$0xff]  ;;  %v464_v6 = vld [vmem:[#allocation9 + $0x58] sm:$0xff]  ;;  %v463_v7 = vld [vmem:[#allocation9 + $0x50] sm:$0xff]  ;;  %s1831_s8 = sld [smem:[#allocation27_spill]] }
  0x5b   : > { %929 = vmatpush.msra.mxu3 %v468_v2  ;;  %v462_v8 = vld [vmem:[#allocation9 + $0x48] sm:$0xff]  ;;  %v461_v9 = vld [vmem:[#allocation9 + $0x40] sm:$0xff]  ;;  %v460_v10 = vld [vmem:[#allocation9 + $0x38] sm:$0xff]  ;;  %s1833_s17 = sld [smem:[#allocation30_spill]] }
  0x5c   : > { %930 = vmatpush.msra.mxu1 %v467_v3  ;;  %474 = vmatpush.msra.mxu0 %v467_v3  ;;  %v459_v11 = vld [vmem:[#allocation9 + $0x30] sm:$0xff]  ;;  %v458_v12 = vld [vmem:[#allocation9 + $0x28] sm:$0xff]  ;;  %v457_v13 = vld [vmem:[#allocation9 + $0x20] sm:$0xff]  ;;  %s609_s24 = sld [smem:[#allocation5]] }
  0x5d   : > { %931 = vmatpush.msra.mxu3 %v467_v3  ;;  %v456_v14 = vld [vmem:[#allocation9 + $0x18] sm:$0xff]  ;;  %v455_v15 = vld [vmem:[#allocation9 + $0x10] sm:$0xff]  ;;  %v454_v16 = vld [vmem:[#allocation9 + $0x8] sm:$0xff] }
  0x5e   : > { %932 = vmatpush.msra.mxu1 %v466_v4  ;;  %475 = vmatpush.msra.mxu0 %v466_v4  ;;  %v453_v17 = vld [vmem:[#allocation9] sm:$0xff]  ;;  %v442_v18 = vld [vmem:[%s1593_s1 + $0x30] sm:$0xff]  ;;  %v553_v20 = vld [vmem:[#allocation11 + $0x78] sm:$0xff] }
  0x5f   : > { %933 = vmatpush.msra.mxu3 %v466_v4  ;;  %v1621_v19 = vld [vmem:[%s1593_s1] sm:$0xff]  ;;  %v447_v21 = vld [vmem:[%s1593_s1 + $0x58] sm:$0xff]  ;;  %v552_v22 = vld [vmem:[#allocation11 + $0x70] sm:$0xff] }
  0x60   : > { %934 = vmatpush.msra.mxu1 %v465_v5  ;;  %476 = vmatpush.msra.mxu0 %v465_v5  ;;  %v551_v23 = vld [vmem:[#allocation11 + $0x68] sm:$0xff]  ;;  %v1626_v24 = vld [vmem:[%s1593_s1 + $0x78] sm:$0xff]  ;;  %v550_v25 = vld [vmem:[#allocation11 + $0x60] sm:$0xff] }
  0x61   : > { %935 = vmatpush.msra.mxu3 %v465_v5  ;;  %v450_v26 = vld [vmem:[%s1593_s1 + $0x70] sm:$0xff]  ;;  %v443_v27 = vld [vmem:[%s1593_s1 + $0x38] sm:$0xff]  ;;  %v437_v28 = vld [vmem:[%s1593_s1 + $0x8] sm:$0xff] }
  0x62   : > { %936 = vmatpush.msra.mxu1 %v464_v6  ;;  %477 = vmatpush.msra.mxu0 %v464_v6  ;;  %v549_v29 = vld [vmem:[#allocation11 + $0x58] sm:$0xff]  ;;  %v449_v30 = vld [vmem:[%s1593_s1 + $0x68] sm:$0xff]  ;;  %v448_v31 = vld [vmem:[%s1593_s1 + $0x60] sm:$0xff] }
  0x63   : > { %937 = vmatpush.msra.mxu3 %v464_v6  ;;  %v548_v32 = vld [vmem:[#allocation11 + $0x50] sm:$0xff]  ;;  %v547_v33 = vld [vmem:[#allocation11 + $0x48] sm:$0xff]  ;;  %v546_v34 = vld [vmem:[#allocation11 + $0x40] sm:$0xff] }
  0x64   : > { %938 = vmatpush.msra.mxu1 %v463_v7  ;;  %478 = vmatpush.msra.mxu0 %v463_v7  ;;  %v446_v35 = vld [vmem:[%s1593_s1 + $0x50] sm:$0xff]  ;;  %v444_v36 = vld [vmem:[%s1593_s1 + $0x40] sm:$0xff]  ;;  %v545_v38 = vld [vmem:[#allocation11 + $0x38] sm:$0xff] }
  0x65   : > { %939 = vmatpush.msra.mxu3 %v463_v7  ;;  %v438_v37 = vld [vmem:[%s1593_s1 + $0x10] sm:$0xff]  ;;  %v445_v39 = vld [vmem:[%s1593_s1 + $0x48] sm:$0xff]  ;;  %v542_v42 = vld [vmem:[#allocation11 + $0x20] sm:$0xff] }
  0x66   : > { %940 = vmatpush.msra.mxu1 %v462_v8  ;;  %479 = vmatpush.msra.mxu0 %v462_v8  ;;  %v544_v40 = vld [vmem:[#allocation11 + $0x30] sm:$0xff]  ;;  %v543_v41 = vld [vmem:[#allocation11 + $0x28] sm:$0xff]  ;;  %v439_v43 = vld [vmem:[%s1593_s1 + $0x18] sm:$0xff] }
  0x67   : > { %941 = vmatpush.msra.mxu3 %v462_v8  ;;  %v541_v44 = vld [vmem:[#allocation11 + $0x18] sm:$0xff]  ;;  %v441_v45 = vld [vmem:[%s1593_s1 + $0x28] sm:$0xff]  ;;  %v540_v46 = vld [vmem:[#allocation11 + $0x10] sm:$0xff] }
  0x68   : > { %942 = vmatpush.msra.mxu1 %v461_v9  ;;  %480 = vmatpush.msra.mxu0 %v461_v9  ;;  %v440_v47 = vld [vmem:[%s1593_s1 + $0x20] sm:$0xff]  ;;  %v539_v48 = vld [vmem:[#allocation11 + $0x8] sm:$0xff]  ;;  %v452_v50 = vld [vmem:[%s427_s27] sm:$0x1]  ;;  %s1832_s1 = sld [smem:[#allocation20_spill]] }
  0x69   : > { %943 = vmatpush.msra.mxu3 %v461_v9  ;;  %v538_v49 = vld [vmem:[#allocation11] sm:$0xff]  ;;  %v554_v62 = vld [vmem:[%s1830_s14] sm:$0x1] }
  0x6a   : > { %944 = vmatpush.msra.mxu1 %v460_v10  ;;  %481 = vmatpush.msra.mxu0 %v460_v10  ;;  %v1658_v63 = vld [vmem:[%s1831_s8] ss:$0 sm:$0xff] }
  0x6b   : > { %945 = vmatpush.msra.mxu3 %v460_v10 }
  0x6c   : > { %946 = vmatpush.msra.mxu1 %v459_v11  ;;  %482 = vmatpush.msra.mxu0 %v459_v11 }
  0x6d   : > { %947 = vmatpush.msra.mxu3 %v459_v11 }
  0x6e   : > { %948 = vmatpush.msra.mxu1 %v458_v12  ;;  %483 = vmatpush.msra.mxu0 %v458_v12  ;;  %s631_s25 = scalar_lea.vmem %s1616_s26, %s1832_s1 [#allocation13]  ;;  %p923_p4 = scmp.ne.s32.totalorder %s1832_s1, 1 }
  0x6f   : > { %949 = vmatpush.msra.mxu3 %v458_v12 }
  0x70   : > { %950 = vmatpush.msra.mxu1 %v457_v13  ;;  %484 = vmatpush.msra.mxu0 %v457_v13 }
  0x71   : > { %951 = vmatpush.msra.mxu3 %v457_v13 }
  0x72   : > { %952 = vmatpush.msra.mxu1 %v456_v14  ;;  %485 = vmatpush.msra.mxu0 %v456_v14 }
  0x73   : > { %953 = vmatpush.msra.mxu3 %v456_v14 }
  0x74   : > { %954 = vmatpush.msra.mxu1 %v455_v15  ;;  %486 = vmatpush.msra.mxu0 %v455_v15 }
  0x75   : > { %955 = vmatpush.msra.mxu3 %v455_v15 }
  0x76   : > { %956 = vmatpush.msra.mxu1 %v454_v16  ;;  %487 = vmatpush.msra.mxu0 %v454_v16 }
  0x77   : > { %957 = vmatpush.msra.mxu3 %v454_v16 }
  0x78   : > { %958 = vmatpush.msra.mxu1 %v453_v17  ;;  %488 = vmatpush.msra.mxu0 %v453_v17 }
  0x79   : > { %507 = vmatmul.f32.vlgmr.msra.gmra.mxu1 %v442_v18  ;;  %489 = vmatmul.f32.vlgmr.msra.gmra.mxu0 %v1621_v19 }
  0x7a   : > { %555 = vmatpush.msrb.mxu1 %v553_v20  ;;  %959 = vmatpush.msra.mxu3 %v453_v17 }
  0x7b   : > { %522 = vmatmul.f32.vlgmr.msra.gmra.mxu3 %v447_v21 }
  0x7c   : > { %556 = vmatpush.msrb.mxu1 %v552_v22  ;;  %665 = vmatpush.msrb.mxu3 %v1626_v24 }
  0x7e   : > { %557 = vmatpush.msrb.mxu1 %v551_v23  ;;  %666 = vmatpush.msrb.mxu3 %v450_v26 }
  0x80   : > { %558 = vmatpush.msrb.mxu1 %v550_v25  ;;  %667 = vmatpush.msrb.mxu3 %v449_v30 }
  0x81   : > { %510 = vmatmul.f32.gmra.mxu1 %v443_v27  ;;  %492 = vmatmul.f32.gmra.mxu0 %v437_v28 }
  0x82   : > { %559 = vmatpush.msrb.mxu1 %v549_v29  ;;  %668 = vmatpush.msrb.mxu3 %v448_v31 }
  0x83   : > { %525 = vmatmul.f32.gmra.mxu3 %v448_v31 }
  0x84   : > { %560 = vmatpush.msrb.mxu1 %v548_v32  ;;  %669 = vmatpush.msrb.mxu3 %v447_v21 }
  0x86   : > { %561 = vmatpush.msrb.mxu1 %v547_v33  ;;  %670 = vmatpush.msrb.mxu3 %v446_v35 }
  0x88   : > { %562 = vmatpush.msrb.mxu1 %v546_v34  ;;  %671 = vmatpush.msrb.mxu3 %v445_v39 }
  0x89   : > { %513 = vmatmul.f32.gmra.mxu1 %v444_v36  ;;  %495 = vmatmul.f32.gmra.mxu0 %v438_v37 }
  0x8a   : > { %563 = vmatpush.msrb.mxu1 %v545_v38  ;;  %672 = vmatpush.msrb.mxu3 %v444_v36 }
  0x8b   : > { %528 = vmatmul.f32.gmra.mxu3 %v449_v30 }
  0x8c   : > { %564 = vmatpush.msrb.mxu1 %v544_v40  ;;  %673 = vmatpush.msrb.mxu3 %v443_v27 }
  0x8e   : > { %565 = vmatpush.msrb.mxu1 %v543_v41  ;;  %674 = vmatpush.msrb.mxu3 %v442_v18 }
  0x90   : > { %566 = vmatpush.msrb.mxu1 %v542_v42  ;;  %675 = vmatpush.msrb.mxu3 %v441_v45 }
  0x91   : > { %516 = vmatmul.f32.gmra.mxu1 %v445_v39  ;;  %498 = vmatmul.f32.gmra.mxu0 %v439_v43 }
  0x92   : > { %567 = vmatpush.msrb.mxu1 %v541_v44  ;;  %676 = vmatpush.msrb.mxu3 %v440_v47 }
  0x93   : > { %531 = vmatmul.f32.gmra.mxu3 %v450_v26 }
  0x94   : > { %568 = vmatpush.msrb.mxu1 %v540_v46  ;;  %677 = vmatpush.msrb.mxu3 %v439_v43 }
  0x96   : > { %569 = vmatpush.msrb.mxu1 %v539_v48  ;;  %678 = vmatpush.msrb.mxu3 %v438_v37 }
  0x98   : > { %570 = vmatpush.msrb.mxu1 %v538_v49  ;;  %679 = vmatpush.msrb.mxu3 %v437_v28 }
  0x99   : > { %519 = vmatmul.f32.gmra.mxu1 %v446_v35  ;;  %501 = vmatmul.f32.gmra.mxu0 %v440_v47 }
  0x9a   : > { %680 = vmatpush.msrb.mxu3 %v1621_v19 }
  0x9b   : > { %534 = vmatmul.f32.gmra.mxu3 %v1626_v24 }
  0xa1   : > { %571 = vmatmul.f32.vlgmr.msrb.gmra.mxu1 %v452_v50  ;;  %504 = vmatmul.f32.gmra.mxu0 %v441_v45 }
  0xf6   : > { %v508_v51 = vpop.f32.mrf.mxu1  ;;  %v1648_v58 = vpop.f32.mrf.mxu0 }
  0xf7   : > { %v509_v33 = vadd.f32 %v1658_v63, %v508_v51  ;;  %v491_v49 = vadd.f32 %v1658_v63, %v1648_v58 }
  0xfe   : > { %v511_v52 = vpop.f32.mrf.mxu1  ;;  %v523_v53 = vpop.f32.mrf.mxu3 }
  0xff   : > { %v1650_v61 = vpop.f32.mrf.mxu0  ;;  %v524_v16 = vadd.f32 %v1658_v63, %v523_v53  ;;  %v512_v29 = vadd.f32 %v1658_v63, %v511_v52 }
 0x100   : > { %v494_v46 = vadd.f32 %v1658_v63, %v1650_v61  ;;  %v1395_v61 = vmov 0  }
 0x101   : > { %1094 = vset.pattern.permute.xlu0 %v1395_v61  ;;  %1095 = vset.pattern.permute.xlu1 %v1395_v61 }
 0x106   : > { %v514_v54 = vpop.f32.mrf.mxu1  ;;  %v526_v55 = vpop.f32.mrf.mxu3 }
 0x107   : > { %v496_v7 = vpop.f32.mrf.mxu0  ;;  %v527_v12 = vadd.f32 %v1658_v63, %v526_v55  ;;  %v515_v26 = vadd.f32 %v1658_v63, %v514_v54 }
 0x108   : > { %v497_v43 = vadd.f32 %v1658_v63, %v496_v7 }
 0x10e   : > { %v517_v56 = vpop.f32.mrf.mxu1  ;;  %v529_v57 = vpop.f32.mrf.mxu3 }
 0x10f   : > { %v530_v9 = vadd.f32 %v1658_v63, %v529_v57  ;;  %v499_v14 = vpop.f32.mrf.mxu0  ;;  %v518_v22 = vadd.f32 %v1658_v63, %v517_v56  ;;  %v608_v56 = vld [vmem:[%s1833_s17] sm:$0x1]  ;;  %v610_v57 = vstv %s609_s24 }
 0x110   : > { %v500_v40 = vadd.f32 %v1658_v63, %v499_v14 }
 0x116   : > { %v520_v59 = vpop.f32.mrf.mxu1  ;;  %v532_v60 = vpop.f32.mrf.mxu3 }
 0x117   : > { %v533_v6 = vadd.f32 %v1658_v63, %v532_v60  ;;  %v521_v19 = vadd.f32 %v1658_v63, %v520_v59  ;;  %v502_v23 = vpop.f32.mrf.mxu0 }
 0x118   : > { %v503_v37 = vadd.f32 %v1658_v63, %v502_v23 }
 0x11e   : > { %v572_v0 = vpop.f32.mrf.mxu1  ;;  %v535_v2 = vpop.f32.mrf.mxu3 }
 0x11f   : > { %v573_v1 = vadd.f32 %v572_v0, %v554_v62  ;;  %v536_v3 = vadd.f32 %v1658_v63, %v535_v2  ;;  %v505_v31 = vpop.f32.mrf.mxu0  ;;  %v637_v62 = vld [vmem:[#allocation2] sm:$0x1] }
 0x120   : > { %v506_v34 = vadd.f32 %v1658_v63, %v505_v31 }
 0x121   : > { %v1661_v4 = vperm.slane %v573_v1, 0 }
 0x123   : > { %v591_v5 = vadd.f32 %v1661_v4, %v536_v3  ;;  %v590_v8 = vadd.f32 %v1661_v4, %v533_v6  ;;  %v589_v10 = vadd.f32 %v1661_v4, %v530_v9  ;;  %v588_v13 = vadd.f32 %v1661_v4, %v527_v12 }
 0x124   : > { %v587_v17 = vadd.f32 %v1661_v4, %v524_v16  ;;  %v586_v20 = vadd.f32 %v1661_v4, %v521_v19  ;;  %v585_v24 = vadd.f32 %v1661_v4, %v518_v22  ;;  %v584_v27 = vadd.f32 %v1661_v4, %v515_v26  ;;  %v657_v16 = vld [vmem:[#allocation4] sm:$0x1] }
 0x125   : > { %1097 = vtanh.f32 %v591_v5  ;;  %v583_v30 = vadd.f32 %v1661_v4, %v512_v29  ;;  %v582_v35 = vadd.f32 %v1661_v4, %v509_v33  ;;  %v581_v38 = vadd.f32 %v1661_v4, %v506_v34 }
 0x126   : > { %1099 = vtanh.f32 %v590_v8  ;;  %v580_v41 = vadd.f32 %v1661_v4, %v503_v37  ;;  %v579_v44 = vadd.f32 %v1661_v4, %v500_v40  ;;  %v578_v47 = vadd.f32 %v1661_v4, %v497_v43 }
 0x127   : > { %1101 = vtanh.f32 %v589_v10  ;;  %v577_v50 = vadd.f32 %v1661_v4, %v494_v46  ;;  %v576_v52 = vadd.f32 %v1661_v4, %v491_v49 }
 0x128   : > { %1103 = vtanh.f32 %v588_v13 }
 0x129   : > { %1105 = vtanh.f32 %v587_v17 }
 0x12a   : > { %1107 = vtanh.f32 %v586_v20 }
 0x12b   : > { %v1098_v11 = vpop.eup %1097  ;;  %1109 = vtanh.f32 %v585_v24 }
 0x12c   : > { %611 = vmatpush.xpose.msra.mxu2 %v1098_v11  ;;  %v1100_v15 = vpop.eup %1099  ;;  %1111 = vtanh.f32 %v584_v27  ;;  %v651_v11 = vld [vmem:[#allocation3] sm:$0x1] }
 0x12d   : > { %v1102_v18 = vpop.eup %1101  ;;  %1113 = vtanh.f32 %v583_v30 }
 0x12e   : > { %v1104_v21 = vpop.eup %1103  ;;  %1115 = vtanh.f32 %v582_v35 }
 0x12f   : > { %v1106_v25 = vpop.eup %1105  ;;  %1117 = vtanh.f32 %v581_v38 }
 0x130   : > { %612 = vmatpush.xpose.msra.mxu2 %v1100_v15  ;;  %v1108_v28 = vpop.eup %1107  ;;  %1119 = vtanh.f32 %v580_v41 }
 0x131   : > { %v1110_v32 = vpop.eup %1109  ;;  %1121 = vtanh.f32 %v579_v44 }
 0x132   : > { %v1112_v36 = vpop.eup %1111  ;;  %1123 = vtanh.f32 %v578_v47 }
 0x133   : > { %v1114_v39 = vpop.eup %1113  ;;  %1125 = vtanh.f32 %v577_v50 }
 0x134   : > { %613 = vmatpush.xpose.msra.mxu2 %v1102_v18  ;;  %v1116_v42 = vpop.eup %1115  ;;  %1127 = vtanh.f32 %v576_v52 }
 0x135   : > { %v1118_v45 = vpop.eup %1117 }
 0x136   : > { %v1120_v48 = vpop.eup %1119 }
 0x137   : > { %v1122_v51 = vpop.eup %1121 }
 0x138   : > { %614 = vmatpush.xpose.msra.mxu2 %v1104_v21  ;;  %v1124_v53 = vpop.eup %1123 }
 0x139   : > { %v1126_v54 = vpop.eup %1125 }
 0x13a   : > { %v1128_v55 = vpop.eup %1127 }
 0x13c   : > { %615 = vmatpush.xpose.msra.mxu2 %v1106_v25 }
 0x140   : > { %616 = vmatpush.xpose.msra.mxu2 %v1108_v28 }
 0x144   : > { %617 = vmatpush.xpose.msra.mxu2 %v1110_v32 }
 0x148   : > { %618 = vmatpush.xpose.msra.mxu2 %v1112_v36 }
 0x14c   : > { %619 = vmatpush.xpose.msra.mxu2 %v1114_v39 }
 0x150   : > { %620 = vmatpush.xpose.msra.mxu2 %v1116_v42 }
 0x154   : > { %621 = vmatpush.xpose.msra.mxu2 %v1118_v45 }
 0x158   : > { %622 = vmatpush.xpose.msra.mxu2 %v1120_v48 }
 0x15c   : > { %623 = vmatpush.xpose.msra.mxu2 %v1122_v51 }
 0x160   : > { %624 = vmatpush.xpose.msra.mxu2 %v1124_v53 }
 0x164   : > { %625 = vmatpush.xpose.msra.mxu2 %v1126_v54 }
 0x168   : > { %626 = vmatpush.xpose.msra.mxu2 %v1128_v55 }
 0x16b   : > { %627 = vmatmul.f32.vlgmr.msra.gmra.mxu2 %v608_v56 }
 0x1ee   : > { %v628_v58 = vpop.f32.mrf.mxu2 }
 0x1ef   : > { %v629_v59 = vadd.f32 %v628_v58, %v610_v57 }
 0x1f1   : > { %632 = vst [vmem:[%s631_s25] sm:$0x1] %v629_v59  ;;  %v634_v60 = vsel %vm633_vm1, %v629_v59, -inf }
 0x1f2   : > { %635 = vmax.xlane.f32.xlu0 %v634_v60 }
 0x265   : > { %v636_v63 = vpop.xlane.xlu0 %635 }
 0x266   : > { %v638_v0 = vmax.f32 %v637_v62, %v636_v63 }
 0x268   : > { %v639_v1 = vsub.f32 %v637_v62, %v638_v0  ;;  %687 = vst.msk [vmem:[#allocation2] sm:$0x1] %vm686_vm2, %v638_v0  ;;  %644 = vperm.xlu0 %1094, %v638_v0  }
 0x26a   : > { %v640_v2 = vmul.f32 1.442695, %v639_v1 }
 0x26c   : > { %1129 = vpow2.f32 %v640_v2 }
 0x272   : > { %v1130_v3 = vpop.eup %1129 }
 0x273   : > { %660 = vperm.xlu1 %1095, %v1130_v3   ;;  %v652_v12 = vmul.f32 %v1130_v3, %v651_v11 }
 0x2da   : > { %v645_v4 = vpop.permute.xlu0 %644 }
 0x2db   : > { %v647_v5 = vperm.slane %v645_v4, 0 }
 0x2dd   : > { %v648_v6 = vsub.f32 %v629_v59, %v647_v5 }
 0x2df   : > { %v649_v7 = vmul.f32 1.442695, %v648_v6 }
 0x2e1   : > { %1131 = vpow2.f32 %v649_v7 }
 0x2e5   : > { %v661_v10 = vpop.permute.xlu1 %660 }
 0x2e6   : > { %v663_v15 = vperm.slane %v661_v10, 0 }
 0x2e7   : > { %v1132_v8 = vpop.eup %1131 }
 0x2e8   : > { %681 = vmatmul.f32.vlgmr.msrb.gmra.mxu3 %v1132_v8  ;;  %v653_v9 = vsel %vm633_vm1, %v1132_v8, 0.0  ;;  %v664_v17 = vmul.f32 %v663_v15, %v657_v16 }
 0x2e9   : > { %654 = vadd.xlane.f32.xlu1 %v653_v9 }
 0x35c   : > { %v655_v13 = vpop.xlane.xlu1 %654 }
 0x35d   : > { %v656_v14 = vadd.f32 %v655_v13, %v652_v12 }
 0x35f   : > { %688 = vst.msk [vmem:[#allocation3] sm:$0x1] %vm686_vm2, %v656_v14 }
 0x36a   : > { %693 = sbr.rel (%p923_p4) target bundleno = 1017 (0x3f9), region = 72 }
 0x36b   : > { %v682_v18 = vpop.f32.mrf.mxu3 }
 0x36c   : > { %v685_v19 = vadd.f32 %v682_v18, %v664_v17 }
 0x36e   : > { %689 = vst [vmem:[#allocation4] sm:$0x1] %v685_v19 }
 0x36f   : > { %v710_v20 = vperm.slane %v638_v0, 0  ;;  %1135 = vrcp.f32 %v656_v14  ;;  %v1396_v21 = vmov 0   ;;  %v705_v24 = vand.u32 2147483648, %v656_v14  ;;  %v709_v33 = vld [vmem:[%s1616_s26] sm:$0x3] }
 0x370   : > { %1133 = vset.pattern.permute.xlu0 %v1396_v21  ;;  %1134 = vset.pattern.permute.xlu1 %v1396_v21  ;;  %vm699_vm3 = vweird.f32 %v656_v14  ;;  %v703_v26 = vand.u32 2147483647, %v656_v14 }
 0x371   : > { %712 = vperm.xlu0 %1133, %v710_v20   ;;  %v706_v28 = vor.u32 1.1754944e-38, %v705_v24 }
 0x372   : > { %vm704_vm6 = vcmp.eq.f32.partialorder %v703_v26, 8.507059e+37 }
 0x375   : > { %v1136_v22 = vpop.eup %1135 }
 0x376   : > { %v695_v23 = vmul.f32 %v1136_v22, %v656_v14  ;;  %vm700_vm4 = vweird.f32 %v1136_v22 }
 0x377   : > { %vm701_vm5 = vmor %vm699_vm3, %vm700_vm4 }
 0x378   : > { %v696_v25 = vsub.f32 1.0, %v695_v23 }
 0x37a   : > { %v697_v27 = vmul.f32 %v1136_v22, %v696_v25 }
 0x37c   : > { %v698_v29 = vadd.f32 %v1136_v22, %v697_v27 }
 0x37e   : > { %v702_v30 = vsel %vm701_vm5, %v1136_v22, %v698_v29 }
 0x37f   : > { %v707_v31 = vsel %vm704_vm6, %v706_v28, %v702_v30 }
 0x380   : > { %727 = vperm.xlu0 %1133, %v707_v31   ;;  %v719_v32 = vperm.slane %v707_v31, 0 }
 0x382   : > { %721 = vperm.xlu1 %1134, %v719_v32  }
 0x3e3   : > { %v713_v34 = vpop.permute.xlu0 %712 }
 0x3e4   : > { %v715_v35 = vsub.f32 %v709_v33, %v713_v34 }
 0x3e6   : > { %v716_v36 = vmul.f32 1.442695, %v715_v35 }
 0x3e8   : > { %1137 = vpow2.f32 %v716_v36 }
 0x3ee   : > { %v1138_v37 = vpop.eup %1137 }
 0x3f2   : > { %v728_v38 = vpop.permute.xlu0 %727 }
 0x3f3   : > { %v730_v39 = vperm.slane %v728_v38, 0 }
 0x3f4   : > { %v722_v40 = vpop.permute.xlu1 %721 }
 0x3f5   : > { %v731_v41 = vmul.f32 %v730_v39, %v685_v19  ;;  %v724_v42 = vmul.f32 %v1138_v37, %v722_v40 }
 0x3f7   : > { %732 = vst [vmem:[%s416_s21] sm:$0x1] %v731_v41 }
 0x3f8   : > { %725 = vst [vmem:[%s1616_s26] sm:$0x3] %v724_v42 }
 0x3f9 PF: > { %s1834_s27 = sld [smem:[#allocation21_spill]]  ;;  %s749_s30 = sshll.u32 %s416_s21, 4  ;;  %s750_s30 = int_to_ptr.vmem [resolvable:$true] %s749_s30 }
 0x3fa   : > { %s1835_s10 = sld [smem:[#allocation31_spill]]  ;;  %s734_s4 = scalar_lea.sflag [#allocation8], %s1604_s5 }
 0x400   : > { %s747_s2 = scalar_lea.hbm %s1835_s10, %s1834_s27  ;;  %s1249_s7 = scalar_lea.hbm %s1835_s10, 2 }
 0x401   : > { %s751_s14 = sshll.u32 %s747_s2, 4  ;;  %s752_s14 = int_to_ptr.hbm [resolvable:$true] %s751_s14 }
 0x402   : > { %s1243_s6 = sshra.s32 %s752_s14, 4  ;;  %s1244_s6 = int_to_ptr.hbm [resolvable:$true] %s1243_s6 }
 0x403   : > { %s1245_s8 = scalar_lea.hbm %s1244_s6, 1  ;;  %p1250_p5 = scmp.lt.s32.totalorder %s1244_s6, %s1835_s10 }
 0x404   : > { %p1246_p0 = scmp.ne.s32.totalorder %s1244_s6, %s1245_s8  ;;  %p1251_p7 = scmp.lt.s32.totalorder %s1249_s7, %s1245_s8 }
 0x406   : > { %p1247_p2 = pnand %p1246_p0, %p1520_p6  ;;  %p1252_p8 = por %p1251_p7, %p1250_p5 }
 0x408   : > { %p1248_p3 = pneg %p1247_p2 }
 0x40a   : > { %p1253_p9 = pnand %p1252_p8, %p1248_p3 }
 0x40c   : > { %1256 = shalt.err (!%p1253_p9)
}
 0x40d   : > { %970 = dma.vmem_to_hbm [thread:$0]  (%p1520_p6), %s750_s30, 16, %s752_s14, %s734_s4  }
 0x40e   : > { %s925_s21 = sshll.u32 %s1834_s27, 1  ;;  %s1837_s28 = sld [smem:[#allocation32_spill]] }
 0x40f   : > { %s763_s1 = sshll.u32 %s1616_s26, 4  ;;  %s738_s6 = scalar_lea.sflag [#allocation14], %s1604_s5  ;;  %s764_s1 = int_to_ptr.vmem [resolvable:$true] %s763_s1 }
 0x414   : > { %s761_s2 = scalar_lea.hbm %s1837_s28, %s925_s21  ;;  %s1277_s27 = scalar_lea.hbm %s1837_s28, 4 }
 0x415   : > { %s765_s3 = sshll.u32 %s761_s2, 4  ;;  %s766_s3 = int_to_ptr.hbm [resolvable:$true] %s765_s3 }
 0x416   : > { %s1271_s8 = sshra.s32 %s766_s3, 4  ;;  %s1272_s8 = int_to_ptr.hbm [resolvable:$true] %s1271_s8 }
 0x417   : > { %s1273_s7 = scalar_lea.hbm %s1272_s8, 2  ;;  %p1278_p1 = scmp.lt.s32.totalorder %s1272_s8, %s1837_s28 }
 0x418   : > { %p1274_p12 = scmp.ne.s32.totalorder %s1272_s8, %s1273_s7  ;;  %p1279_p4 = scmp.lt.s32.totalorder %s1277_s27, %s1273_s7 }
 0x41a   : > { %p1275_p13 = pnand %p1274_p12, %p1520_p6  ;;  %p1280_p0 = por %p1279_p4, %p1278_p1 }
 0x41c   : > { %p1276_p11 = pneg %p1275_p13 }
 0x41e   : > { %p1281_p2 = pnand %p1280_p0, %p1276_p11 }
 0x420   : > { %1284 = shalt.err (!%p1281_p2)
}
 0x421   : > { %971 = dma.vmem_to_hbm [thread:$0]  (%p1520_p6), %s764_s1, 32, %s766_s3, %s738_s6  }
 0x422 PF: > { %s1838_s5 = sld [smem:[#allocation19_spill]]  ;;  %p997_p3 = scmp.ge.s32.totalorder %s1387_s20, 2 }
 0x424   : > { %p986_p5 = pnand %p997_p3, %p1526_p10 }
 0x426   : > { %p987_p7 = pneg %p986_p5 }
 0x428   : > { %s777_s4 = sand.u32 1, %s1838_s5  }
 0x429   : > { %s778_s21 = scalar_lea.sflag [#allocation8], %s777_s4 }
 0x42a   : > { %1338 = dma.done.wait (%p987_p7), %s778_s21, 16  }
 0x42b   : > { %1340 = vsyncadd (%p987_p7), %s778_s21, 4294967280  ;;  %s787_s25 = scalar_lea.sflag [#allocation14], %s777_s4 }
 0x42c   : > { %1342 = dma.done.wait (%p987_p7), %s787_s25, 32  }
 0x42d   : > { %1344 = vsyncadd (%p987_p7), %s787_s25, 4294967264  ;;  %s31_s20 = sadd.s32 1, %s1387_s20   ;;  %s1840_s29 = smov %s1574_s11 }
 0x42e   : > { %p28_p8 = scmp.ge.s32.totalorder %s31_s20, 6   ;;  %s1841_s23 = sld [smem:[#allocation24_spill]] }
 0x42f   : > { %s1842_s11 = smov %s1351_s12  ;;  %s1843_s12 = smov %s1355_s13 }
 0x430   : > { %s1844_s13 = smov %s1840_s29  ;;  %s1845_s14 = smov %s1363_s15 }
 0x431   : > { %s1846_s15 = smov %s1367_s16  ;;  %s1847_s16 = smov %s1577_s9 }
 0x432   : > { %s1848_s7 = smov %s1379_s18  ;;  %s1849_s17 = smov %s1383_s19 }
 0x433   : > { %s1851_s19 = smov %s1857_s22  ;;  %30 = sbr.rel (!%p28_p8) target bundleno = 22 (0x16), region = 134 }
 0x434   : > { %s1850_s18 = smov %s1841_s23 }
 0x438   :  { %793 = vsyncpa [#allocation7], 1 }
 0x439   :  { %795 = vsyncpa [#allocation7 + $0x1], 1 }
 0x43a   :  { %796 = vsyncpa [#allocation10], 1 }
 0x43b   :  { %797 = vsyncpa [#allocation8], 1 }
 0x43c   :  { %799 = vsyncpa [#allocation8 + $0x1], 1 }
 0x43d   :  { %800 = vsyncpa [#allocation14], 1 }
 0x43e   :  { %802 = vsyncpa [#allocation14 + $0x1], 1 }

</bundles_post_ra>
